<compile_context>
chip_gen: v5e
topology: v5e:2x2
jax: 0.10.0
libtpu: 0.0.40
codegen_flags: <defaults>
</compile_context>

<pallas_src>
import functools

import jax
import jax.numpy as jnp
from jax.experimental import pallas as pl
from jax.experimental.pallas import tpu as pltpu


def ppo_critic_kernel(x_ref, w1_ref, b1_ref, w2_ref, b2_ref, w3_ref, b3_ref,
                      o_ref, *, compute_dtype):
    """Fused 3-layer MLP forward for one batch tile.

    x_ref : [TM, D]   f32 input tile (cast to compute_dtype at the MXU feed)
    w1    : [D,  H0]  (compute dtype)   b1: [1,  H0] (f32)
    w2    : [H0, H1]  (compute dtype)   b2: [H1, 1 ] (f32, column)
    w3    : [1,  H1]  (compute dtype)   b3: [1,  1 ] (f32)
    o_ref : [1,  TM]  lane-dense value output (reshaped to [B] in the wrapper)
    """
    cdt = compute_dtype
    x = x_ref[...].astype(cdt)          # free cast; x stays f32 in HBM

    # Layer 1: x @ W1 (+b1), tanh.  [TM, H0]; weight stays MXU-resident.
    h1 = jnp.dot(x, w1_ref[...], preferred_element_type=jnp.float32) + b1_ref[...]
    h1 = jnp.tanh(h1.astype(cdt))       # bf16 tanh when cdt=bf16 (v6e/v7x EUP)

    # Layer 2 in transposed, lane-dense form: [H1, TM] = W2^T @ h1^T.
    h2t = jax.lax.dot_general(
        w2_ref[...], h1,
        dimension_numbers=(((0,), (1,)), ((), ())),
        preferred_element_type=jnp.float32) + b2_ref[...]
    h2t = jnp.tanh(h2t.astype(cdt))

    # Output layer (Identity activation): [1, TM] row -> unmasked full-lane store.
    v = jnp.dot(w3_ref[...], h2t, preferred_element_type=jnp.float32) + b3_ref[...]
    o_ref[...] = v.astype(o_ref.dtype)


def _round_up(x, m):
    return ((x + m - 1) // m) * m


def _pick_tile_m(batch, feat_dim, x_itemsize, tile_m=None, target_bytes=512 * 1024):
    """Batch-tile rows: multiple of 128, sized by bytes of x moved per step."""
    batch128 = _round_up(batch, 128)
    if tile_m is not None:
        return min(max(128, _round_up(int(tile_m), 128)), batch128)
    if batch128 <= 256:
        return batch128                               # one small tile
    # ~target_bytes of x per grid step (amortizes ~0.35 us per-step overhead) ...
    by_bytes = max(128, (target_bytes // (feat_dim * x_itemsize) // 128) * 128)
    # ... but keep >= 2 grid steps so both v7x TensorCores get work.
    by_split = _round_up(pl.cdiv(batch, 2), 128)
    return max(128, min(by_bytes, by_split, batch128))


def prepare_params(params, compute_dtype=jnp.float32):
    """One-time cast/reshape of the weights (hoisted out of the hot path)."""
    w1, b1, w2, b2, w3, b3 = params
    return (
        w1.astype(compute_dtype),                       # [D, H0]
        b1.reshape(1, -1).astype(jnp.float32),          # [1, H0]
        w2.astype(compute_dtype),                       # [H0, H1]
        b2.reshape(-1, 1).astype(jnp.float32),          # [H1, 1]  (column)
        w3.reshape(1, -1).astype(compute_dtype),        # [1, H1]  (row)
        b3.reshape(1, 1).astype(jnp.float32),           # [1, 1]
    )


def ppo_critic_forward(x, prepared_params, *, tile_m=None, target_bytes=512 * 1024):
    """Runs the fused critic MLP. Returns values of shape [B] (squeeze(-1))."""
    w1, b1, w2, b2, w3row, b3 = prepared_params
    B, D = x.shape
    H0 = w1.shape[1]
    H1 = w2.shape[1]
    compute_dtype = w1.dtype

    tm = _pick_tile_m(B, D, x.dtype.itemsize, tile_m, target_bytes)
    num_tiles = pl.cdiv(B, tm)          # ragged last tile handled by Pallas

    w_item = jnp.dtype(compute_dtype).itemsize
    cost = pl.CostEstimate(
        flops=2 * B * (D * H0 + H0 * H1 + H1),
        transcendentals=B * (H0 + H1),
        bytes_accessed=(B * D * x.dtype.itemsize          # x read (f32, once)
                        + num_tiles * tm * 4               # values written
                        + (D * H0 + H0 * H1 + H1) * w_item  # weights
                        + (H0 + H1 + 1) * 4),               # biases
    )

    out = pl.pallas_call(
        functools.partial(ppo_critic_kernel, compute_dtype=compute_dtype),
        out_shape=jax.ShapeDtypeStruct((num_tiles, 1, tm), jnp.float32),
        grid_spec=pltpu.PrefetchScalarGridSpec(
            num_scalar_prefetch=0,
            grid=(num_tiles,),
            in_specs=[
                pl.BlockSpec((tm, D), lambda i: (i, 0)),    # x tile (streams)
                pl.BlockSpec((D, H0), lambda i: (0, 0)),    # w1 (resident)
                pl.BlockSpec((1, H0), lambda i: (0, 0)),    # b1
                pl.BlockSpec((H0, H1), lambda i: (0, 0)),   # w2
                pl.BlockSpec((H1, 1), lambda i: (0, 0)),    # b2 column
                pl.BlockSpec((1, H1), lambda i: (0, 0)),    # w3 row
                pl.BlockSpec((1, 1), lambda i: (0, 0)),     # b3
            ],
            # Lane-dense output: one [1, tm] row per grid step (unmasked vst).
            out_specs=pl.BlockSpec((None, 1, tm), lambda i: (i, 0, 0)),
        ),
        compiler_params=pltpu.CompilerParams(
            dimension_semantics=("parallel",),
            vmem_limit_bytes=32 * 1024 * 1024),
        cost_estimate=cost,
    )(x, w1, b1, w2, b2, w3row, b3)

    # torch.squeeze(net(x), -1); drop rows from the ragged last tile.
    return out.reshape(num_tiles * tm)[:B]


def init_params(key, input_dim, hidden_sizes):
    """Deterministic synthetic init (shapes match the nn.Linear layers)."""
    sizes = [input_dim] + list(hidden_sizes) + [1]
    params = []
    for i in range(len(sizes) - 1):
        fan_in, fan_out = sizes[i], sizes[i + 1]
        key, kw, kb = jax.random.split(key, 3)
        bound = 1.0 / jnp.sqrt(fan_in)
        w = jax.random.uniform(kw, (fan_in, fan_out), jnp.float32, -bound, bound)
        b = jax.random.uniform(kb, (1, fan_out), jnp.float32, -bound, bound)
        params.extend([w, b])
    return tuple(params)


def reference_forward(x, params):
    """Pure-JAX reference of the same MLP for a sanity check."""
    w1, b1, w2, b2, w3, b3 = params
    h = jnp.tanh(x @ w1 + b1)
    h = jnp.tanh(h @ w2 + b2)
    v = h @ w3 + b3
    return jnp.squeeze(v, axis=-1)


if __name__ == "__main__":
    key = jax.random.PRNGKey(0)
    key, kx, kp = jax.random.split(key, 3)

    INPUT_DIM = 32
    HIDDEN_SIZES = (64, 64)
    raw_params = init_params(kp, INPUT_DIM, HIDDEN_SIZES)

    # Cast weights ONCE (not per forward call).
    params_f32 = prepare_params(raw_params, jnp.float32)      # default / v5e
    params_bf16 = prepare_params(raw_params, jnp.bfloat16)    # v6e/v7x fast path

    # Case 1: small odd batch -> single 128-row tile, ragged reads, no pad pass.
    x_small = jax.random.normal(kx, (50, INPUT_DIM), jnp.float32)
    v_small = jax.block_until_ready(ppo_critic_forward(x_small, params_f32))
    ref_small = reference_forward(x_small, raw_params)
    assert v_small.shape == (50,), v_small.shape
    assert jnp.allclose(v_small, ref_small, atol=1e-5, rtol=1e-5), "f32 single-tile mismatch"

    # Case 2: auto tile choice -> 2 parallel grid steps (last one ragged).
    key, kx2 = jax.random.split(key)
    x_big = jax.random.normal(kx2, (384, INPUT_DIM), jnp.float32)
    v_big = jax.block_until_ready(ppo_critic_forward(x_big, params_f32))
    ref_big = reference_forward(x_big, raw_params)
    assert v_big.shape == (384,), v_big.shape
    assert jnp.allclose(v_big, ref_big, atol=1e-5, rtol=1e-5), "f32 auto-tile mismatch"

    # Case 3: explicit tile override -> 3 exact 128-row tiles.
    v_tiled = jax.block_until_ready(ppo_critic_forward(x_big, params_f32, tile_m=128))
    assert jnp.allclose(v_tiled, ref_big, atol=1e-5, rtol=1e-5), "f32 multi-tile mismatch"

    # Case 4: bf16 operands + bf16 tanh (v6e/v7x EUP path); relaxed tolerance —
    # keep the f32 path when exact critic values are required.
    v_bf16 = jax.block_until_ready(ppo_critic_forward(x_big, params_bf16))
    assert jnp.allclose(v_bf16, ref_big, atol=1e-1, rtol=1e-1), "bf16 mismatch"

    print("KERNEL_OK")
</pallas_src>

<mosaic_0001>
module attributes {stable_mosaic.version = 11 : i64} {
  func.func @ppo_critic_kernel(%arg0: i32, %arg1: memref<128x32xf32, #tpu.memory_space<vmem>>, %arg2: memref<32x64xf32, #tpu.memory_space<vmem>>, %arg3: memref<1x64xf32, #tpu.memory_space<vmem>>, %arg4: memref<64x64xf32, #tpu.memory_space<vmem>>, %arg5: memref<64x1xf32, #tpu.memory_space<vmem>>, %arg6: memref<1x64xf32, #tpu.memory_space<vmem>>, %arg7: memref<1x1xf32, #tpu.memory_space<vmem>>, %arg8: memref<1x1x128xf32, #tpu.memory_space<vmem>>) attributes {dimension_semantics = [#tpu.dimension_semantics<parallel>], iteration_bounds = array<i64: 1>, scalar_prefetch = 0 : i64, scratch_operands = 0 : i64, tpu.core_type = #tpu.core_type<tc>, window_params = [{transform_indices = @transform_0, window_bounds = array<i64: 128, 32>}, {pipeline_mode = #tpu.pipeline_mode<synchronous>, transform_indices = @transform_1, window_bounds = array<i64: 32, 64>}, {pipeline_mode = #tpu.pipeline_mode<synchronous>, transform_indices = @transform_2, window_bounds = array<i64: 1, 64>}, {pipeline_mode = #tpu.pipeline_mode<synchronous>, transform_indices = @transform_3, window_bounds = array<i64: 64, 64>}, {pipeline_mode = #tpu.pipeline_mode<synchronous>, transform_indices = @transform_4, window_bounds = array<i64: 64, 1>}, {pipeline_mode = #tpu.pipeline_mode<synchronous>, transform_indices = @transform_5, window_bounds = array<i64: 1, 64>}, {pipeline_mode = #tpu.pipeline_mode<synchronous>, transform_indices = @transform_6, window_bounds = array<i64: 1, 1>}, {transform_indices = @transform_7, window_bounds = array<i64: 1, 1, 128>}]} {
    %c0 = arith.constant 0 : index
    %c0_0 = arith.constant 0 : index
    %0 = vector.load %arg1[%c0, %c0_0] : memref<128x32xf32, #tpu.memory_space<vmem>>, vector<128x32xf32>
    %c0_1 = arith.constant 0 : index
    %c0_2 = arith.constant 0 : index
    %1 = vector.load %arg2[%c0_1, %c0_2] : memref<32x64xf32, #tpu.memory_space<vmem>>, vector<32x64xf32>
    %cst = arith.constant dense<0.000000e+00> : vector<128x64xf32>
    %2 = tpu.matmul %0, %1, %cst {dimension_numbers = #tpu.dot_dimension_numbers<[1], [0], [0], [1], [0, 0, 1, 1], [], []>} : vector<128x32xf32>, vector<32x64xf32>, vector<128x64xf32> -> vector<128x64xf32>
    %c0_3 = arith.constant 0 : index
    %c0_4 = arith.constant 0 : index
    %3 = vector.load %arg3[%c0_3, %c0_4] : memref<1x64xf32, #tpu.memory_space<vmem>>, vector<1x64xf32>
    %4 = vector.broadcast %3 : vector<1x64xf32> to vector<128x64xf32>
    %5 = arith.addf %2, %4 : vector<128x64xf32>
    %6 = math.tanh %5 : vector<128x64xf32>
    %c0_5 = arith.constant 0 : index
    %c0_6 = arith.constant 0 : index
    %7 = vector.load %arg4[%c0_5, %c0_6] : memref<64x64xf32, #tpu.memory_space<vmem>>, vector<64x64xf32>
    %cst_7 = arith.constant dense<0.000000e+00> : vector<64x128xf32>
    %8 = tpu.matmul %7, %6, %cst_7 {dimension_numbers = #tpu.dot_dimension_numbers<[0], [1], [1], [0], [0, 1, 1, 0], [], []>} : vector<64x64xf32>, vector<128x64xf32>, vector<64x128xf32> -> vector<64x128xf32>
    %c0_8 = arith.constant 0 : index
    %c0_9 = arith.constant 0 : index
    %9 = vector.load %arg5[%c0_8, %c0_9] : memref<64x1xf32, #tpu.memory_space<vmem>>, vector<64x1xf32>
    %10 = vector.broadcast %9 : vector<64x1xf32> to vector<64x128xf32>
    %11 = arith.addf %8, %10 : vector<64x128xf32>
    %12 = math.tanh %11 : vector<64x128xf32>
    %c0_10 = arith.constant 0 : index
    %c0_11 = arith.constant 0 : index
    %13 = vector.load %arg6[%c0_10, %c0_11] : memref<1x64xf32, #tpu.memory_space<vmem>>, vector<1x64xf32>
    %cst_12 = arith.constant dense<0.000000e+00> : vector<1x128xf32>
    %14 = tpu.matmul %13, %12, %cst_12 {dimension_numbers = #tpu.dot_dimension_numbers<[1], [0], [0], [1], [0, 0, 1, 1], [], []>} : vector<1x64xf32>, vector<64x128xf32>, vector<1x128xf32> -> vector<1x128xf32>
    %c0_13 = arith.constant 0 : index
    %c0_14 = arith.constant 0 : index
    %15 = vector.load %arg7[%c0_13, %c0_14] : memref<1x1xf32, #tpu.memory_space<vmem>>, vector<1x1xf32>
    %16 = vector.broadcast %15 : vector<1x1xf32> to vector<1x128xf32>
    %17 = arith.addf %14, %16 : vector<1x128xf32>
    %c0_15 = arith.constant 0 : index
    %c0_16 = arith.constant 0 : index
    %c0_17 = arith.constant 0 : index
    %18 = vector.load %arg8[%c0_15, %c0_16, %c0_17] : memref<1x1x128xf32, #tpu.memory_space<vmem>>, vector<1x1x128xf32>
    %19 = vector.shape_cast %18 : vector<1x1x128xf32> to vector<1x128xf32>
    %20 = vector.shape_cast %17 : vector<1x128xf32> to vector<1x1x128xf32>
    tpu.vector_store %arg8[%c0_15, %c0_16, %c0_17], %20 {strides = array<i32>} : memref<1x1x128xf32, #tpu.memory_space<vmem>>, vector<1x1x128xf32>,
    return
  }
  func.func @transform_0(%arg0: i32) -> (i32, i32) {
    %c0_i32 = arith.constant 0 : i32
    %c0_i32_0 = arith.constant 0 : i32
    return %arg0, %c0_i32 : i32, i32
  }
  func.func @transform_1(%arg0: i32) -> (i32, i32) {
    %c0_i32 = arith.constant 0 : i32
    %c0_i32_0 = arith.constant 0 : i32
    %c0_i32_1 = arith.constant 0 : i32
    return %c0_i32, %c0_i32_0 : i32, i32
  }
  func.func @transform_2(%arg0: i32) -> (i32, i32) {
    %c0_i32 = arith.constant 0 : i32
    %c0_i32_0 = arith.constant 0 : i32
    %c0_i32_1 = arith.constant 0 : i32
    return %c0_i32, %c0_i32_0 : i32, i32
  }
  func.func @transform_3(%arg0: i32) -> (i32, i32) {
    %c0_i32 = arith.constant 0 : i32
    %c0_i32_0 = arith.constant 0 : i32
    %c0_i32_1 = arith.constant 0 : i32
    return %c0_i32, %c0_i32_0 : i32, i32
  }
  func.func @transform_4(%arg0: i32) -> (i32, i32) {
    %c0_i32 = arith.constant 0 : i32
    %c0_i32_0 = arith.constant 0 : i32
    %c0_i32_1 = arith.constant 0 : i32
    return %c0_i32, %c0_i32_0 : i32, i32
  }
  func.func @transform_5(%arg0: i32) -> (i32, i32) {
    %c0_i32 = arith.constant 0 : i32
    %c0_i32_0 = arith.constant 0 : i32
    %c0_i32_1 = arith.constant 0 : i32
    return %c0_i32, %c0_i32_0 : i32, i32
  }
  func.func @transform_6(%arg0: i32) -> (i32, i32) {
    %c0_i32 = arith.constant 0 : i32
    %c0_i32_0 = arith.constant 0 : i32
    %c0_i32_1 = arith.constant 0 : i32
    return %c0_i32, %c0_i32_0 : i32, i32
  }
  func.func @transform_7(%arg0: i32) -> (i32, i32, i32) {
    %c0_i32 = arith.constant 0 : i32
    %c0_i32_0 = arith.constant 0 : i32
    %c0_i32_1 = arith.constant 0 : i32
    return %arg0, %c0_i32, %c0_i32_0 : i32, i32, i32
  }
}

</mosaic_0001>

<bundles_post_ra>
// kernel: tpu_custom_call.1
= control target key start
LH: loop header
LB: loop body
LE: loop exit
PB: predicated region body
PF: predicated region fallthrough
CT: control target
= control target key end

     0   :  { %s917_s0 = inlined_call_operand.vmem [shape: f32[50,32], index: 0, kind: input, shape index: {}]   ;;  %s918_s1 = inlined_call_operand.vmem [shape: f32[32,64], index: 1, kind: input, shape index: {}]   ;;  %s919_s2 = inlined_call_operand.vmem [shape: f32[1,64], index: 2, kind: input, shape index: {}]   ;;  %s920_s3 = inlined_call_operand.vmem [shape: f32[64,64], index: 3, kind: input, shape index: {}]   ;;  %s921_s4 = inlined_call_operand.vmem [shape: f32[64,1], index: 4, kind: input, shape index: {}]   ;;  %s922_s5 = inlined_call_operand.vmem [shape: f32[1,64], index: 5, kind: input, shape index: {}]   ;;  %s923_s6 = inlined_call_operand.<no memory space> [shape: f32[1,1], index: 6, kind: input, shape index: {}]   ;;  %s924_s7 = inlined_call_operand.hbm [shape: f32[1,1,128], index: 7, kind: output, shape index: {}]  }
   0x1   :  { %v12_v0 = vstv %s923_s6 }
   0x2   :  { %13 = vst [vmem:[#allocation2] sm:$0x1] %v12_v0 }
   0x3   :  { %v48_v1 = vld [vmem:[%s918_s1 + $0x18] sm:$0xff]  ;;  %v47_v2 = vld [vmem:[%s918_s1 + $0x10] sm:$0xff]  ;;  %v46_v3 = vld [vmem:[%s918_s1 + $0x8] sm:$0xff] }
   0x4   :  { %482 = vmatpush.msra.mxu3 %v48_v1  ;;  %114 = vmatpush.msra.mxu0 %v48_v1  ;;  %v45_v4 = vld [vmem:[%s918_s1] sm:$0xff] }
   0x6   :  { %483 = vmatpush.msra.mxu3 %v47_v2  ;;  %115 = vmatpush.msra.mxu0 %v47_v2 }
   0x7   :  { %14 = vsyncpa [#allocation4], 0  ;;  %v38_v5 = vld [vmem:[%s917_s0 + $0x48] sm:$0xff]  ;;  %vm53_vm0 = vcmask 261120   ;;  %v29_v6 = vld [vmem:[%s917_s0] sm:$0xff]  ;;  %vm271_vm1 = vcmask 523264  }
   0x8   :  { %484 = vmatpush.msra.mxu3 %v46_v3  ;;  %116 = vmatpush.msra.mxu0 %v46_v3  ;;  %v183_v7 = vld [vmem:[%s920_s3] sm:$0xff]  ;;  %v39_v8 = vld [vmem:[%s917_s0 + $0x50] sm:$0xff]  ;;  %v30_v9 = vld [vmem:[%s917_s0 + $0x8] sm:$0xff]  ;;  %v615_v57 = vmov 0   ;;  %s616_s23 = smov [#allocation3]   ;;  %s432_s27 = sshll.u32 %s924_s7, 4  ;;  %s433_s27 = int_to_ptr.hbm [resolvable:$true] %s432_s27 }
   0x9   :  { %239 = vxpose.xlu0.b32.start [1/8] (short) (narrow) %v183_v7, 64  ;;  %v184_v10 = vld [vmem:[%s920_s3 + $0x8] sm:$0xff]  ;;  %v40_v11 = vld [vmem:[%s917_s0 + $0x58] sm:$0xff]  ;;  %v31_v12 = vld [vmem:[%s917_s0 + $0x10] sm:$0xff]  ;;  %537 = vset.pattern.permute.xlu1 %v615_v57  ;;  %s430_s24 = sshll.u32 %s616_s23, 4  ;;  %s431_s24 = int_to_ptr.vmem [resolvable:$true] %s430_s24 }
   0xa   :  { %485 = vmatpush.msra.mxu3 %v45_v4  ;;  %117 = vmatpush.msra.mxu0 %v45_v4  ;;  %v185_v13 = vld [vmem:[%s920_s3 + $0x10] sm:$0xff]  ;;  %v41_v14 = vld [vmem:[%s917_s0 + $0x60] sm:$0xff]  ;;  %v32_v15 = vld [vmem:[%s917_s0 + $0x18] sm:$0xff] }
   0xb   :  { %450 = vmatmul.msk.f32.vlgmr.msra.gmra.mxu3 %vm53_vm0, %v38_v5  ;;  %441 = vmatmul.msk.f32.vlgmr.msra.gmra.mxu0 %vm53_vm0, %v29_v6  ;;  %v186_v16 = vld [vmem:[%s920_s3 + $0x18] sm:$0xff]  ;;  %v42_v17 = vld [vmem:[%s917_s0 + $0x68] sm:$0xff]  ;;  %v33_v18 = vld [vmem:[%s917_s0 + $0x20] sm:$0xff] }
   0xc   :  { %v187_v19 = vld [vmem:[%s920_s3 + $0x20] sm:$0xff]  ;;  %v43_v20 = vld [vmem:[%s917_s0 + $0x70] sm:$0xff]  ;;  %v34_v21 = vld [vmem:[%s917_s0 + $0x28] sm:$0xff]  ;;  %538 = vset.pattern.permute.xlu2 %v615_v57 }
   0xd   :  { %v188_v22 = vld [vmem:[%s920_s3 + $0x28] sm:$0xff]  ;;  %v44_v23 = vld [vmem:[%s917_s0 + $0x78] sm:$0xff]  ;;  %v35_v24 = vld [vmem:[%s917_s0 + $0x30] sm:$0xff] }
   0xe   :  { %v189_v25 = vld [vmem:[%s920_s3 + $0x30] sm:$0xff]  ;;  %v36_v26 = vld [vmem:[%s917_s0 + $0x38] sm:$0xff]  ;;  %v37_v28 = vld [vmem:[%s917_s0 + $0x40] sm:$0xff] }
   0xf   :  { %v190_v27 = vld [vmem:[%s920_s3 + $0x38] sm:$0xff]  ;;  %v775_v41 = vld [vmem:[%s919_s2] ss:$0 sm:$0xff]  ;;  %v197_v63 = vld [vmem:[%s921_s4 + $0x30] sm:$0xff] }
  0x10   :  { %v198_v56 = vld [vmem:[%s921_s4 + $0x38] sm:$0xff] }
  0x11   :  { %240 = vxpose.xlu0.b32.cont [2/8] (short) (narrow) %v184_v10, 64  ;;  %236 = vperm.xlu1 %537, %v198_v56   ;;  %v194_v6 = vld [vmem:[%s921_s4 + $0x18] sm:$0xff]  ;;  %v192_v10 = vld [vmem:[%s921_s4 + $0x8] sm:$0xff] }
  0x13   :  { %451 = vmatmul.msk.f32.gmra.mxu3 %vm53_vm0, %v39_v8  ;;  %442 = vmatmul.msk.f32.gmra.mxu0 %vm53_vm0, %v30_v9 }
  0x19   :  { %241 = vxpose.xlu0.b32.cont [3/8] (short) (narrow) %v185_v13, 64  ;;  %231 = vperm.xlu1 %537, %v197_v63   ;;  %v393_v63 = vld [vmem:[%s922_s5] sm:$0x1] }
  0x1b   :  { %452 = vmatmul.msk.f32.gmra.mxu3 %vm53_vm0, %v40_v11  ;;  %443 = vmatmul.msk.f32.gmra.mxu0 %vm53_vm0, %v31_v12 }
  0x21   :  { %242 = vxpose.xlu0.b32.cont [4/8] (short) (narrow) %v186_v16, 64  ;;  %216 = vperm.xlu1 %537, %v194_v6   ;;  %v196_v16 = vld [vmem:[%s921_s4 + $0x28] sm:$0xff] }
  0x22   :  { %226 = vperm.xlu2 %538, %v196_v16  }
  0x23   :  { %453 = vmatmul.msk.f32.gmra.mxu3 %vm53_vm0, %v41_v14  ;;  %444 = vmatmul.msk.f32.gmra.mxu0 %vm53_vm0, %v32_v15 }
  0x29   :  { %243 = vxpose.xlu0.b32.cont [5/8] (short) (narrow) %v187_v19, 64  ;;  %206 = vperm.xlu1 %537, %v192_v10  }
  0x2b   :  { %454 = vmatmul.msk.f32.gmra.mxu3 %vm53_vm0, %v42_v17  ;;  %445 = vmatmul.msk.f32.gmra.mxu0 %vm53_vm0, %v33_v18  ;;  %v394_v17 = vld [vmem:[#allocation2] sm:$0x1] }
  0x31   :  { %244 = vxpose.xlu0.b32.cont [6/8] (short) (narrow) %v188_v22, 64  ;;  %397 = vperm.xlu1 %537, %v394_v17   ;;  %v195_v22 = vld [vmem:[%s921_s4 + $0x20] sm:$0xff] }
  0x32   :  { %221 = vperm.xlu2 %538, %v195_v22  }
  0x33   :  { %455 = vmatmul.msk.f32.gmra.mxu3 %vm53_vm0, %v43_v20  ;;  %446 = vmatmul.msk.f32.gmra.mxu0 %vm53_vm0, %v34_v21 }
  0x39   :  { %245 = vxpose.xlu0.b32.cont [7/8] (short) (narrow) %v189_v25, 64 }
  0x3b   :  { %456 = vmatmul.msk.f32.gmra.mxu3 %vm53_vm0, %v44_v23  ;;  %447 = vmatmul.msk.f32.gmra.mxu0 %vm53_vm0, %v35_v24 }
  0x41   :  { %246 = vxpose.xlu0.b32.end [8/8] (short) (narrow) %v190_v27, 64  ;;  %v193_v27 = vld [vmem:[%s921_s4 + $0x10] sm:$0xff] }
  0x42   :  { %211 = vperm.xlu2 %538, %v193_v27  }
  0x43   :  { %448 = vmatmul.msk.f32.gmra.mxu0 %vm53_vm0, %v36_v26 }
  0x4b   :  { %449 = vmatmul.msk.f32.gmra.mxu0 %vm53_vm0, %v37_v28 }
  0x88   :  { %v760_v29 = vpop.f32.mrf.mxu0 }
  0x89   :  { %v120_v23 = vadd.f32 %v775_v41, %v760_v29 }
  0x8e   :  { %v146_v30 = vpop.f32.mrf.mxu3 }
  0x8f   :  { %v147_v60 = vadd.f32 %v775_v41, %v146_v30  ;;  %v191_v30 = vld [vmem:[%s921_s4] sm:$0xff] }
  0x90   :  { %v762_v31 = vpop.f32.mrf.mxu0  ;;  %201 = vperm.xlu2 %538, %v191_v30  }
  0x91   :  { %v123_v20 = vadd.f32 %v775_v41, %v762_v31 }
  0x96   :  { %v149_v32 = vpop.f32.mrf.mxu3 }
  0x97   :  { %v150_v54 = vadd.f32 %v775_v41, %v149_v32  ;;  %v237_v32 = vpop.permute.xlu1 %236 }
  0x98   :  { %v764_v33 = vpop.f32.mrf.mxu0 }
  0x99   :  { %v126_v18 = vadd.f32 %v775_v41, %v764_v33  ;;  %v227_v33 = vpop.permute.xlu2 %226 }
  0x9e   :  { %v152_v34 = vpop.f32.mrf.mxu3 }
  0x9f   :  { %v153_v52 = vadd.f32 %v775_v41, %v152_v34 }
  0xa0   :  { %v766_v35 = vpop.f32.mrf.mxu0 }
  0xa1   :  { %v129_v13 = vadd.f32 %v775_v41, %v766_v35  ;;  %v232_v35 = vpop.permute.xlu1 %231 }
  0xa6   :  { %v155_v36 = vpop.f32.mrf.mxu3 }
  0xa7   :  { %v156_v49 = vadd.f32 %v775_v41, %v155_v36  ;;  %v222_v36 = vpop.permute.xlu2 %221 }
  0xa8   :  { %v768_v37 = vpop.f32.mrf.mxu0  ;;  %539 = vset.pattern.permute.xlu0 %v615_v57 }
  0xa9   :  { %v132_v11 = vadd.f32 %v775_v41, %v768_v37 }
  0xad   :  { %v782_v48 = vpop.trf.xlu0 }
  0xae   :  { %v158_v38 = vpop.f32.mrf.mxu3 }
  0xaf   :  { %v159_v46 = vadd.f32 %v775_v41, %v158_v38 }
  0xb0   :  { %v770_v40 = vpop.f32.mrf.mxu0 }
  0xb1   :  { %v135_v7 = vadd.f32 %v775_v41, %v770_v40  ;;  %v217_v40 = vpop.permute.xlu1 %216 }
  0xb5   :  { %v799_v55 = vpop.trf.xlu0 }
  0xb6   :  { %v161_v39 = vpop.f32.mrf.mxu3 }
  0xb7   :  { %v162_v45 = vadd.f32 %v775_v41, %v161_v39 }
  0xb8   :  { %v778_v44 = vpop.f32.mrf.mxu0 }
  0xb9   :  { %v138_v5 = vadd.f32 %v775_v41, %v778_v44 }
  0xbd   :  { %v817_v1 = vpop.trf.xlu0 }
  0xbe   :  { %v164_v42 = vpop.f32.mrf.mxu3 }
  0xbf   :  { %v165_v43 = vadd.f32 %v775_v41, %v164_v42  ;;  %v212_v42 = vpop.permute.xlu2 %211 }
  0xc0   :  { %v140_v50 = vpop.f32.mrf.mxu0 }
  0xc1   :  { %541 = vtanh.f32 %v165_v43  ;;  %v141_v2 = vadd.f32 %v775_v41, %v140_v50 }
  0xc2   :  { %543 = vtanh.f32 %v162_v45 }
  0xc3   :  { %545 = vtanh.f32 %v159_v46 }
  0xc4   :  { %547 = vtanh.f32 %v156_v49 }
  0xc5   :  { %549 = vtanh.f32 %v153_v52  ;;  %v839_v8 = vpop.trf.xlu0 }
  0xc6   :  { %551 = vtanh.f32 %v150_v54 }
  0xc7   :  { %v542_v47 = vpop.eup %541  ;;  %553 = vtanh.f32 %v147_v60 }
  0xc8   :  { %457 = vmatpush.xpose.msk.msrb.mxu0 %vm271_vm1, %v542_v47  ;;  %486 = vmatpush.xpose.msk.msra.mxu1 %vm271_vm1, %v542_v47  ;;  %v544_v51 = vpop.eup %543  ;;  %v143_v59 = vpop.f32.mrf.mxu0 }
  0xc9   :  { %487 = vmatpush.xpose.msk.msra.mxu2 %vm271_vm1, %v542_v47  ;;  %488 = vmatpush.xpose.msk.msrb.mxu3 %vm271_vm1, %v542_v47  ;;  %v546_v53 = vpop.eup %545  ;;  %v144_v62 = vadd.f32 %v775_v41, %v143_v59 }
  0xca   :  { %v548_v58 = vpop.eup %547 }
  0xcb   :  { %v550_v61 = vpop.eup %549  ;;  %555 = vtanh.f32 %v144_v62 }
  0xcc   :  { %458 = vmatpush.xpose.msk.msrb.mxu0 %vm271_vm1, %v544_v51  ;;  %489 = vmatpush.xpose.msk.msra.mxu1 %vm271_vm1, %v544_v51  ;;  %v552_v0 = vpop.eup %551  ;;  %557 = vtanh.f32 %v141_v2 }
  0xcd   :  { %490 = vmatpush.xpose.msk.msra.mxu2 %vm271_vm1, %v544_v51  ;;  %491 = vmatpush.xpose.msk.msrb.mxu3 %vm271_vm1, %v544_v51  ;;  %v554_v3 = vpop.eup %553  ;;  %559 = vtanh.f32 %v138_v5  ;;  %v259_v15 = vpop.trf.xlu0 }
  0xce   :  { %561 = vtanh.f32 %v135_v7  ;;  %v207_v51 = vpop.permute.xlu1 %206 }
  0xcf   :  { %563 = vtanh.f32 %v132_v11 }
  0xd0   :  { %459 = vmatpush.xpose.msk.msrb.mxu0 %vm271_vm1, %v546_v53  ;;  %492 = vmatpush.xpose.msk.msra.mxu1 %vm271_vm1, %v546_v53  ;;  %565 = vtanh.f32 %v129_v13 }
  0xd1   :  { %493 = vmatpush.xpose.msk.msra.mxu2 %vm271_vm1, %v546_v53  ;;  %494 = vmatpush.xpose.msk.msrb.mxu3 %vm271_vm1, %v546_v53  ;;  %v556_v4 = vpop.eup %555  ;;  %567 = vtanh.f32 %v126_v18 }
  0xd2   :  { %v558_v9 = vpop.eup %557  ;;  %569 = vtanh.f32 %v123_v20 }
  0xd3   :  { %v560_v12 = vpop.eup %559  ;;  %571 = vtanh.f32 %v120_v23 }
  0xd4   :  { %460 = vmatpush.xpose.msk.msrb.mxu0 %vm271_vm1, %v548_v58  ;;  %495 = vmatpush.xpose.msk.msra.mxu1 %vm271_vm1, %v548_v58  ;;  %v562_v14 = vpop.eup %561 }
  0xd5   :  { %496 = vmatpush.xpose.msk.msra.mxu2 %vm271_vm1, %v548_v58  ;;  %497 = vmatpush.xpose.msk.msrb.mxu3 %vm271_vm1, %v548_v58  ;;  %v564_v19 = vpop.eup %563  ;;  %v260_v24 = vpop.trf.xlu0 }
  0xd6   :  { %v566_v21 = vpop.eup %565 }
  0xd7   :  { %v568_v25 = vpop.eup %567 }
  0xd8   :  { %461 = vmatpush.xpose.msk.msrb.mxu0 %vm271_vm1, %v550_v61  ;;  %498 = vmatpush.xpose.msk.msra.mxu1 %vm271_vm1, %v550_v61  ;;  %v570_v26 = vpop.eup %569 }
  0xd9   :  { %499 = vmatpush.xpose.msk.msra.mxu2 %vm271_vm1, %v550_v61  ;;  %500 = vmatpush.xpose.msk.msrb.mxu3 %vm271_vm1, %v550_v61  ;;  %v572_v28 = vpop.eup %571 }
  0xdc   :  { %462 = vmatpush.xpose.msk.msrb.mxu0 %vm271_vm1, %v552_v0  ;;  %501 = vmatpush.xpose.msk.msra.mxu1 %vm271_vm1, %v552_v0 }
  0xdd   :  { %502 = vmatpush.xpose.msk.msra.mxu2 %vm271_vm1, %v552_v0  ;;  %503 = vmatpush.xpose.msk.msrb.mxu3 %vm271_vm1, %v552_v0  ;;  %v261_v29 = vpop.trf.xlu0 }
  0xe0   :  { %463 = vmatpush.xpose.msk.msrb.mxu0 %vm271_vm1, %v554_v3  ;;  %504 = vmatpush.xpose.msk.msra.mxu1 %vm271_vm1, %v554_v3 }
  0xe1   :  { %505 = vmatpush.xpose.msk.msra.mxu2 %vm271_vm1, %v554_v3  ;;  %506 = vmatpush.xpose.msk.msrb.mxu3 %vm271_vm1, %v554_v3 }
  0xe4   :  { %464 = vmatpush.xpose.msk.msrb.mxu0 %vm271_vm1, %v556_v4  ;;  %507 = vmatpush.xpose.msk.msra.mxu1 %vm271_vm1, %v556_v4 }
  0xe5   :  { %508 = vmatpush.xpose.msk.msra.mxu2 %vm271_vm1, %v556_v4  ;;  %509 = vmatpush.xpose.msk.msrb.mxu3 %vm271_vm1, %v556_v4  ;;  %v262_v31 = vpop.trf.xlu0 }
  0xe8   :  { %465 = vmatpush.xpose.msk.msrb.mxu0 %vm271_vm1, %v558_v9  ;;  %510 = vmatpush.xpose.msk.msra.mxu1 %vm271_vm1, %v558_v9 }
  0xe9   :  { %511 = vmatpush.xpose.msk.msra.mxu2 %vm271_vm1, %v558_v9  ;;  %512 = vmatpush.xpose.msk.msrb.mxu3 %vm271_vm1, %v558_v9 }
  0xea   :  { %v202_v53 = vpop.permute.xlu2 %201 }
  0xec   :  { %466 = vmatpush.xpose.msk.msrb.mxu0 %vm271_vm1, %v560_v12  ;;  %513 = vmatpush.xpose.msk.msra.mxu1 %vm271_vm1, %v560_v12 }
  0xed   :  { %514 = vmatpush.xpose.msk.msra.mxu2 %vm271_vm1, %v560_v12  ;;  %515 = vmatpush.xpose.msk.msrb.mxu3 %vm271_vm1, %v560_v12 }
  0xf0   :  { %467 = vmatpush.xpose.msk.msrb.mxu0 %vm271_vm1, %v562_v14  ;;  %516 = vmatpush.xpose.msk.msra.mxu1 %vm271_vm1, %v562_v14 }
  0xf1   :  { %517 = vmatpush.xpose.msk.msra.mxu2 %vm271_vm1, %v562_v14  ;;  %518 = vmatpush.xpose.msk.msrb.mxu3 %vm271_vm1, %v562_v14 }
  0xf4   :  { %468 = vmatpush.xpose.msk.msrb.mxu0 %vm271_vm1, %v564_v19  ;;  %519 = vmatpush.xpose.msk.msra.mxu1 %vm271_vm1, %v564_v19 }
  0xf5   :  { %520 = vmatpush.xpose.msk.msra.mxu2 %vm271_vm1, %v564_v19  ;;  %521 = vmatpush.xpose.msk.msrb.mxu3 %vm271_vm1, %v564_v19 }
  0xf8   :  { %469 = vmatpush.xpose.msk.msrb.mxu0 %vm271_vm1, %v566_v21  ;;  %522 = vmatpush.xpose.msk.msra.mxu1 %vm271_vm1, %v566_v21 }
  0xf9   :  { %523 = vmatpush.xpose.msk.msra.mxu2 %vm271_vm1, %v566_v21  ;;  %524 = vmatpush.xpose.msk.msrb.mxu3 %vm271_vm1, %v566_v21 }
  0xfc   :  { %470 = vmatpush.xpose.msk.msrb.mxu0 %vm271_vm1, %v568_v25  ;;  %525 = vmatpush.xpose.msk.msra.mxu1 %vm271_vm1, %v568_v25 }
  0xfd   :  { %526 = vmatpush.xpose.msk.msra.mxu2 %vm271_vm1, %v568_v25  ;;  %527 = vmatpush.xpose.msk.msrb.mxu3 %vm271_vm1, %v568_v25 }
 0x100   :  { %471 = vmatpush.xpose.msk.msrb.mxu0 %vm271_vm1, %v570_v26  ;;  %528 = vmatpush.xpose.msk.msra.mxu1 %vm271_vm1, %v570_v26 }
 0x101   :  { %529 = vmatpush.xpose.msk.msra.mxu2 %vm271_vm1, %v570_v26  ;;  %530 = vmatpush.xpose.msk.msrb.mxu3 %vm271_vm1, %v570_v26 }
 0x104   :  { %472 = vmatpush.xpose.msk.msrb.mxu0 %vm271_vm1, %v572_v28  ;;  %531 = vmatpush.xpose.msk.msra.mxu1 %vm271_vm1, %v572_v28 }
 0x105   :  { %532 = vmatpush.xpose.msk.msra.mxu2 %vm271_vm1, %v572_v28  ;;  %533 = vmatpush.xpose.msk.msrb.mxu3 %vm271_vm1, %v572_v28 }
 0x107   :  { %473 = vmatmul.msk.f32.vlgmr.msrb.gmra.mxu0 %vm271_vm1, %v782_v48  ;;  %474 = vmatmul.msk.f32.vlgmr.msra.gmra.mxu1 %vm271_vm1, %v799_v55 }
 0x108   :  { %477 = vmatmul.msk.f32.vlgmr.msra.gmra.mxu2 %vm271_vm1, %v259_v15  ;;  %479 = vmatmul.msk.f32.vlgmr.msrb.gmra.mxu3 %vm271_vm1, %v261_v29 }
 0x10f   :  { %475 = vmatmul.msk.f32.gmra.mxu1 %vm271_vm1, %v817_v1  ;;  %v398_v1 = vpop.permute.xlu1 %397 }
 0x110   :  { %478 = vmatmul.msk.f32.gmra.mxu2 %vm271_vm1, %v260_v24  ;;  %480 = vmatmul.msk.f32.gmra.mxu3 %vm271_vm1, %v262_v31  ;;  %v400_v2 = vperm.slane %v398_v1, 0 }
 0x117   :  { %476 = vmatmul.msk.f32.gmra.mxu1 %vm271_vm1, %v839_v8 }
 0x184   :  { %v364_v34 = vpop.f32.mrf.mxu1  ;;  %v361_v54 = vpop.f32.mrf.mxu0 }
 0x185   :  { %v365_v56 = vadd.f32 %v364_v34, %v207_v51  ;;  %v362_v58 = vadd.f32 %v361_v54, %v202_v53 }
 0x18b   :  { %v373_v37 = vpop.f32.mrf.mxu2  ;;  %v379_v38 = vpop.f32.mrf.mxu3 }
 0x18c   :  { %v367_v39 = vpop.f32.mrf.mxu1  ;;  %v380_v45 = vadd.f32 %v379_v38, %v232_v35  ;;  %v374_v48 = vadd.f32 %v373_v37, %v222_v36 }
 0x18d   :  { %v368_v52 = vadd.f32 %v367_v39, %v212_v42 }
 0x193   :  { %v382_v41 = vpop.f32.mrf.mxu3  ;;  %v376_v43 = vpop.f32.mrf.mxu2 }
 0x194   :  { %v383_v44 = vadd.f32 %v382_v41, %v237_v32  ;;  %v377_v46 = vadd.f32 %v376_v43, %v227_v33  ;;  %v370_v47 = vpop.f32.mrf.mxu1 }
 0x195   :  { %v371_v49 = vadd.f32 %v370_v47, %v217_v40 }
 0x196   :  { %573 = vtanh.f32 %v383_v44 }
 0x197   :  { %575 = vtanh.f32 %v380_v45 }
 0x198   :  { %577 = vtanh.f32 %v377_v46 }
 0x199   :  { %579 = vtanh.f32 %v374_v48 }
 0x19a   :  { %581 = vtanh.f32 %v371_v49 }
 0x19b   :  { %583 = vtanh.f32 %v368_v52 }
 0x19c   :  { %v574_v50 = vpop.eup %573  ;;  %585 = vtanh.f32 %v365_v56 }
 0x19d   :  { %412 = vmatpush.msrb.mxu2 %v574_v50  ;;  %v576_v55 = vpop.eup %575  ;;  %587 = vtanh.f32 %v362_v58 }
 0x19e   :  { %v578_v57 = vpop.eup %577 }
 0x19f   :  { %413 = vmatpush.msrb.mxu2 %v576_v55  ;;  %v580_v59 = vpop.eup %579 }
 0x1a0   :  { %v582_v60 = vpop.eup %581 }
 0x1a1   :  { %414 = vmatpush.msrb.mxu2 %v578_v57  ;;  %v584_v61 = vpop.eup %583 }
 0x1a2   :  { %v586_v62 = vpop.eup %585 }
 0x1a3   :  { %415 = vmatpush.msrb.mxu2 %v580_v59  ;;  %v588_v0 = vpop.eup %587 }
 0x1a5   :  { %416 = vmatpush.msrb.mxu2 %v582_v60 }
 0x1a7   :  { %417 = vmatpush.msrb.mxu2 %v584_v61 }
 0x1a9   :  { %418 = vmatpush.msrb.mxu2 %v586_v62 }
 0x1ab   :  { %419 = vmatpush.msrb.mxu2 %v588_v0 }
 0x1ac   :  { %481 = vmatmul.msk.f32.vlgmr.msrb.gmra.mxu2 %vm271_vm1, %v393_v63 }
 0x22f   :  { %v421_v3 = vpop.f32.mrf.mxu2 }
 0x230   :  { %v422_v4 = vadd.f32 %v421_v3, %v400_v2 }
 0x232   :  { %424 = vst [vmem:[#allocation3] sm:$0x1] %v422_v4 }
 0x233   :  { %435 = dma.vmem_to_hbm [thread:$0]  %s431_s24, 16, %s433_s27, [#allocation4]  }
 0x234   :  { %613 = dma.done.wait [#allocation4], 16  }
 0x235   :  { %614 = vsyncadd [#allocation4], 4294967280 }
 0x236   :  { %440 = vsyncpa [#allocation4], 1 }

</bundles_post_ra>
